<compile_context>
chip_gen: v5e
topology: v5e:2x2
jax: 0.10.0
libtpu: 0.0.40
codegen_flags: <defaults>
</compile_context>

<pallas_src>
import math

import jax
import jax.numpy as jnp
from jax.experimental import pallas as pl
from jax.experimental.pallas import tpu as pltpu


def _round_up(a, b):
    return (a + b - 1) // b * b


def _splinter_attn_kernel(x_ref, mask_ref, wqkv_ref, bqkv_ref, o_ref, qkv_sc):
    """One (batch, query-tile) grid step.

    x_ref    : (1, S_pad, H)            full sequence for this batch element
    mask_ref : (1, 1, S_pad) or (1, TQ, S_pad)   additive attention mask (f32)
    wqkv_ref : (H, 3H)                  fused pre-transposed QKV weights (Q pre-scaled)
    bqkv_ref : (1, 3H)                  fused biases, f32 (Q pre-scaled)
    o_ref    : (1, TQ, H)               output context tile
    qkv_sc   : (S_pad, 3H)              VMEM scratch caching the per-batch projection
    """
    q_idx = pl.program_id(1)
    tq = o_ref.shape[1]
    h = o_ref.shape[2]

    # --- fused QKV projection: computed once per batch element, written once
    #     into a single VMEM scratch (Q/K/V are free static lane views). ---
    @pl.when(q_idx == 0)
    def _():
        x = x_ref[0]                                               # (S_pad, H)
        qkv = jnp.dot(x, wqkv_ref[...],
                      preferred_element_type=jnp.float32)          # MXU, f32 accumulate
        qkv_sc[...] = (qkv + bqkv_ref[...]).astype(qkv_sc.dtype)

    # Two independent half-tiles per grid step (when TQ >= 256) so the LLO
    # scheduler can overlap one sub-tile's softmax (VPU/XLU/EUP) with the
    # other sub-tile's MXU matmuls.
    sub_tq = tq // 2 if (tq >= 256 and tq % 2 == 0) else tq
    n_sub = tq // sub_tq

    for sub in range(n_sub):
        r0 = pl.multiple_of(q_idx * tq + sub * sub_tq, sub_tq)
        q = qkv_sc[pl.ds(r0, sub_tq), :h]                  # (sub_tq, H), pre-scaled by 1/sqrt(H)
        k = qkv_sc[:, h:2 * h]                             # (S_pad, H)
        v = qkv_sc[:, 2 * h:3 * h]                         # (S_pad, H)

        # scores = Q @ K^T expressed through contraction dims (no transpose op)
        scores = jax.lax.dot_general(
            q, k, (((1,), (1,)), ((), ())),
            preferred_element_type=jnp.float32)            # (sub_tq, S_pad)

        if mask_ref.shape[1] == 1:                         # compact [B,1,S] mask
            m_add = mask_ref[0]                            # (1, S_pad) broadcast
        else:                                              # materialized [B,S,S] mask
            m_add = mask_ref[0, sub * sub_tq:(sub + 1) * sub_tq, :]
        scores = scores + m_add.astype(jnp.float32)

        # numerically stable softmax in f32
        mmax = jnp.max(scores, axis=-1, keepdims=True)
        e = jnp.exp(scores - mmax)
        denom = jnp.sum(e, axis=-1, keepdims=True)
        probs = e * pl.reciprocal(denom, approx=True)      # EUP reciprocal (free slot)

        # TODO(synk): nn.Dropout(0.1) on attention_probs is identity in eval mode;
        # a pltpu.prng_seed/prng_random_bits path would be needed for training.

        ctx = jnp.dot(probs.astype(v.dtype), v,
                      preferred_element_type=jnp.float32)  # (sub_tq, H)
        o_ref[0, sub * sub_tq:(sub + 1) * sub_tq, :] = ctx.astype(o_ref.dtype)


def splinter_self_attention(hidden_states, attention_mask, params, *,
                            tq=None, matmul_dtype=jnp.bfloat16,
                            vmem_limit_bytes=None):
    """hidden_states: [B, S, H]; attention_mask: [B, S], [B, 1, S] or [B, S, S] (additive)."""
    B, S, H = hidden_states.shape
    in_dtype = hidden_states.dtype
    cd = jnp.dtype(matmul_dtype) if matmul_dtype is not None else jnp.dtype(in_dtype)

    # --- generation-aware defaults ------------------------------------------
    if tq is None:
        try:
            kind = jax.devices()[0].device_kind.lower()
        except Exception:  # pragma: no cover - defensive
            kind = ""
        # 128x128 MXU on v2-v5 class chips; 256x256 on v6e/v7x.
        tq = 128 if any(v in kind for v in ("v2", "v3", "v4", "v5")) else 256
    if vmem_limit_bytes is None:
        try:
            vmem_cap = pltpu.get_tpu_info().vmem_capacity_bytes
        except Exception:  # pragma: no cover - defensive
            vmem_cap = 64 * 1024 * 1024
        # ~3/4 of physical per-core VMEM: 96 MiB on v5e/v6e, 48 MiB on v7x.
        vmem_limit_bytes = min(int(vmem_cap * 3 // 4), 100 * 1024 * 1024)

    # --- fuse + pre-transpose weights (nn.Linear stores [out, in]); fold the
    #     1/sqrt(H) score scale into Q. -------------------------------------
    scale = 1.0 / math.sqrt(H)
    wqkv = jnp.concatenate(
        [(params["wq"] * scale).T, params["wk"].T, params["wv"].T], axis=1)    # (H, 3H)
    bqkv = jnp.concatenate(
        [params["bq"] * scale, params["bk"], params["bv"]]).reshape(1, 3 * H)

    x = hidden_states.astype(cd)
    wqkv = wqkv.astype(cd)
    bqkv = bqkv.astype(jnp.float32)          # bias added to the f32 accumulator

    if attention_mask.ndim == 2:             # [B, S] -> [B, 1, S]
        attention_mask = attention_mask[:, None, :]
    mask = attention_mask.astype(jnp.float32)

    # --- query tiling: pad S up to a multiple of tq (padded keys masked,
    #     padded query rows sliced off) rather than one giant tq=S tile. -----
    tq = min(tq, _round_up(S, 8))
    s_pad = _round_up(S, tq)
    n_q = s_pad // tq

    if s_pad != S:
        pad = s_pad - S
        x = jnp.pad(x, ((0, 0), (0, pad), (0, 0)))
        # padded key columns: very negative additive mask -> exp() == 0
        mask = jnp.pad(mask, ((0, 0), (0, 0), (0, pad)), constant_values=-1e30)
        if mask.shape[1] != 1:               # full [B,S,S] mask -> pad query rows too
            mask = jnp.pad(mask, ((0, 0), (0, pad), (0, 0)))

    if mask.shape[1] == 1:                   # compact broadcast mask
        mask_spec = pl.BlockSpec((1, 1, s_pad), lambda b, q: (b, 0, 0))
    else:                                    # fully materialized mask
        mask_spec = pl.BlockSpec((1, tq, s_pad), lambda b, q: (b, q, 0))

    # NOTE: for tiny test widths (H < 128) output stores are lane-masked; real
    # Splinter configs (H = 768) are lane-dense multiples of 128.
    # TODO(synk): for B=1 inference on v7x (2 TensorCores) a (B, 2, n_q//2)
    # grid with a parallel middle axis would keep the second core busy.
    def _build(weight_pipeline_mode):
        spec_kwargs = {}
        if weight_pipeline_mode is not None:
            spec_kwargs["pipeline_mode"] = weight_pipeline_mode
        in_specs = [
            # full sequence per batch element; block index constant across the
            # query-tile axis so it is DMA'd once per batch element.
            pl.BlockSpec((1, s_pad, H), lambda b, q: (b, 0, 0)),
            mask_spec,
            # grid-invariant fused weights / bias (single-buffered when supported)
            pl.BlockSpec((H, 3 * H), lambda b, q: (0, 0), **spec_kwargs),
            pl.BlockSpec((1, 3 * H), lambda b, q: (0, 0), **spec_kwargs),
        ]
        return pl.pallas_call(
            _splinter_attn_kernel,
            out_shape=jax.ShapeDtypeStruct((B, s_pad, H), in_dtype),
            grid_spec=pltpu.PrefetchScalarGridSpec(
                num_scalar_prefetch=0,
                grid=(B, n_q),
                in_specs=in_specs,
                out_specs=pl.BlockSpec((1, tq, H), lambda b, q: (b, q, 0)),
                scratch_shapes=[pltpu.VMEM((s_pad, 3 * H), cd)],   # single fused QKV cache
            ),
            compiler_params=pltpu.CompilerParams(
                dimension_semantics=("parallel", "arbitrary"),
                vmem_limit_bytes=vmem_limit_bytes),
        )

    buffered_one = pl.Buffered(1) if hasattr(pl, "Buffered") else None
    try:
        out = _build(buffered_one)(x, mask, wqkv, bqkv)
    except Exception:
        # fall back to default double-buffered weight blocks if single
        # buffering is not supported by this JAX/Mosaic version.
        out = _build(None)(x, mask, wqkv, bqkv)

    if s_pad != S:
        out = out[:, :S, :]
    return out


def _reference(hidden_states, attention_mask, params):
    """Plain-JAX reference matching the PyTorch module's forward pass (eval mode)."""
    H = hidden_states.shape[-1]
    q = hidden_states @ params["wq"].T + params["bq"]
    k = hidden_states @ params["wk"].T + params["bk"]
    v = hidden_states @ params["wv"].T + params["bv"]
    scores = jnp.einsum("bqh,bkh->bqk", q, k) / math.sqrt(H)
    if attention_mask.ndim == 2:
        attention_mask = attention_mask[:, None, :]
    scores = scores + attention_mask
    probs = jax.nn.softmax(scores, axis=-1)
    return jnp.einsum("bqk,bkh->bqh", probs, v)


if __name__ == "__main__":
    B, S, H = 2, 8, 32
    num_attention_heads = 4   # stored by the module but unused in its forward()

    key = jax.random.PRNGKey(0)
    keys = jax.random.split(key, 10)
    bound = 1.0 / math.sqrt(H)
    params = {
        "wq": jax.random.uniform(keys[0], (H, H), jnp.float32, -bound, bound),
        "bq": jax.random.uniform(keys[1], (H,), jnp.float32, -bound, bound),
        "wk": jax.random.uniform(keys[2], (H, H), jnp.float32, -bound, bound),
        "bk": jax.random.uniform(keys[3], (H,), jnp.float32, -bound, bound),
        "wv": jax.random.uniform(keys[4], (H, H), jnp.float32, -bound, bound),
        "bv": jax.random.uniform(keys[5], (H,), jnp.float32, -bound, bound),
    }

    hidden_states = jax.random.normal(keys[6], (B, S, H), jnp.float32)
    # compact additive attention mask [B, 1, S] (0 = keep, -1e9 = masked)
    mask_bits = jax.random.bernoulli(keys[7], 0.9, (B, 1, S))
    attention_mask = jnp.where(mask_bits, 0.0, -1e9).astype(jnp.float32)

    ref = _reference(hidden_states, attention_mask, params)

    # f32 MXU path (tight check; small slack only for the approx EUP reciprocal)
    out_f32 = splinter_self_attention(hidden_states, attention_mask, params,
                                      matmul_dtype=jnp.float32)
    out_f32 = jax.block_until_ready(out_f32)
    assert out_f32.shape == (B, S, H)
    assert jnp.allclose(out_f32, ref, atol=2e-3, rtol=2e-3), "f32 kernel mismatch vs reference"

    # default mixed-precision path: bf16 MXU operands, f32 accumulate + f32 softmax
    out_bf16 = splinter_self_attention(hidden_states, attention_mask, params)
    out_bf16 = jax.block_until_ready(out_bf16)
    assert out_bf16.shape == (B, S, H)
    assert jnp.allclose(out_bf16, ref, atol=5e-2, rtol=5e-2), "bf16 kernel mismatch vs reference"

    # padded / multi-tile / full-[B,S,S]-mask path (S not divisible by tq)
    S2 = 12
    hidden2 = jax.random.normal(keys[8], (B, S2, H), jnp.float32)
    mask_bits2 = jax.random.bernoulli(keys[9], 0.9, (B, S2, S2))
    attn_mask2 = jnp.where(mask_bits2, 0.0, -1e9).astype(jnp.float32)
    ref2 = _reference(hidden2, attn_mask2, params)
    out2 = splinter_self_attention(hidden2, attn_mask2, params,
                                   matmul_dtype=jnp.float32, tq=8)
    out2 = jax.block_until_ready(out2)
    assert out2.shape == (B, S2, H)
    assert jnp.allclose(out2, ref2, atol=2e-3, rtol=2e-3), "padded-tile kernel mismatch vs reference"

    print("KERNEL_OK")
</pallas_src>

<mosaic_0001>
module attributes {stable_mosaic.version = 11 : i64} {
  func.func @_splinter_attn_kernel(%arg0: i32, %arg1: i32, %arg2: memref<1x8x32xf32, #tpu.memory_space<vmem>>, %arg3: memref<1x1x8xf32, #tpu.memory_space<vmem>>, %arg4: memref<32x96xf32, #tpu.memory_space<vmem>>, %arg5: memref<1x96xf32, #tpu.memory_space<vmem>>, %arg6: memref<1x8x32xf32, #tpu.memory_space<vmem>>, %arg7: memref<8x96xf32, #tpu.memory_space<vmem>>) attributes {dimension_semantics = [#tpu.dimension_semantics<parallel>, #tpu.dimension_semantics<arbitrary>], iteration_bounds = array<i64: 2, 1>, scalar_prefetch = 0 : i64, scratch_operands = 1 : i64, tpu.core_type = #tpu.core_type<tc>, window_params = [{transform_indices = @transform_0, window_bounds = array<i64: 1, 8, 32>}, {transform_indices = @transform_1, window_bounds = array<i64: 1, 1, 8>}, {pipeline_mode = #tpu.pipeline_mode<synchronous>, transform_indices = @transform_2, window_bounds = array<i64: 32, 96>}, {pipeline_mode = #tpu.pipeline_mode<synchronous>, transform_indices = @transform_3, window_bounds = array<i64: 1, 96>}, {transform_indices = @transform_4, window_bounds = array<i64: 1, 8, 32>}]} {
    %c0_i32 = arith.constant 0 : i32
    %0 = arith.cmpi eq, %arg1, %c0_i32 : i32
    %1 = arith.extui %0 : i1 to i32
    %c0_i32_0 = arith.constant 0 : i32
    %2 = arith.cmpi ne, %1, %c0_i32_0 : i32
    scf.if %2 {
      %c0_13 = arith.constant 0 : index
      %c0_14 = arith.constant 0 : index
      %c0_15 = arith.constant 0 : index
      %29 = vector.load %arg2[%c0_13, %c0_14, %c0_15] : memref<1x8x32xf32, #tpu.memory_space<vmem>>, vector<1x8x32xf32>
      %30 = vector.shape_cast %29 : vector<1x8x32xf32> to vector<8x32xf32>
      %c0_16 = arith.constant 0 : index
      %c0_17 = arith.constant 0 : index
      %31 = vector.load %arg4[%c0_16, %c0_17] : memref<32x96xf32, #tpu.memory_space<vmem>>, vector<32x96xf32>
      %cst_18 = arith.constant dense<0.000000e+00> : vector<8x96xf32>
      %32 = tpu.matmul %30, %31, %cst_18 {dimension_numbers = #tpu.dot_dimension_numbers<[1], [0], [0], [1], [0, 0, 1, 1], [], []>} : vector<8x32xf32>, vector<32x96xf32>, vector<8x96xf32> -> vector<8x96xf32>
      %c0_19 = arith.constant 0 : index
      %c0_20 = arith.constant 0 : index
      %33 = vector.load %arg5[%c0_19, %c0_20] : memref<1x96xf32, #tpu.memory_space<vmem>>, vector<1x96xf32>
      %34 = vector.broadcast %33 : vector<1x96xf32> to vector<8x96xf32>
      %35 = arith.addf %32, %34 : vector<8x96xf32>
      %c0_21 = arith.constant 0 : index
      %c0_22 = arith.constant 0 : index
      %36 = vector.load %arg7[%c0_21, %c0_22] : memref<8x96xf32, #tpu.memory_space<vmem>>, vector<8x96xf32>
      tpu.vector_store %arg7[%c0_21, %c0_22], %35 {strides = array<i32>} : memref<8x96xf32, #tpu.memory_space<vmem>>, vector<8x96xf32>,
    } else {
    }
    %c8_i32 = arith.constant 8 : i32
    %3 = arith.muli %arg1, %c8_i32 : i32
    %c0_i32_1 = arith.constant 0 : i32
    %4 = arith.addi %3, %c0_i32_1 : i32
    %5 = tpu.assume_multiple %4, 8 : i32
    %6 = arith.index_cast %5 : i32 to index
    %c0 = arith.constant 0 : index
    %7 = vector.load %arg7[%6, %c0] : memref<8x96xf32, #tpu.memory_space<vmem>>, vector<8x32xf32>
    %c0_2 = arith.constant 0 : index
    %c32 = arith.constant 32 : index
    %8 = vector.load %arg7[%c0_2, %c32] : memref<8x96xf32, #tpu.memory_space<vmem>>, vector<8x32xf32>
    %c0_3 = arith.constant 0 : index
    %c64 = arith.constant 64 : index
    %9 = vector.load %arg7[%c0_3, %c64] : memref<8x96xf32, #tpu.memory_space<vmem>>, vector<8x32xf32>
    %cst = arith.constant dense<0.000000e+00> : vector<8x8xf32>
    %10 = tpu.matmul %7, %8, %cst {dimension_numbers = #tpu.dot_dimension_numbers<[1], [1], [0], [0], [0, 0, 1, 0], [], []>} : vector<8x32xf32>, vector<8x32xf32>, vector<8x8xf32> -> vector<8x8xf32>
    %c0_4 = arith.constant 0 : index
    %c0_5 = arith.constant 0 : index
    %c0_6 = arith.constant 0 : index
    %11 = vector.load %arg3[%c0_4, %c0_5, %c0_6] : memref<1x1x8xf32, #tpu.memory_space<vmem>>, vector<1x1x8xf32>
    %12 = vector.shape_cast %11 : vector<1x1x8xf32> to vector<1x8xf32>
    %13 = vector.broadcast %12 : vector<1x8xf32> to vector<8x8xf32>
    %14 = arith.addf %10, %13 : vector<8x8xf32>
    %cst_7 = arith.constant dense<0xFF800000> : vector<8xf32>
    %15 = vector.multi_reduction <maximumf>, %14, %cst_7 [1] : vector<8x8xf32> to vector<8xf32>
    %16 = vector.shape_cast %15 : vector<8xf32> to vector<8x1xf32>
    %17 = vector.broadcast %16 : vector<8x1xf32> to vector<8x8xf32>
    %18 = arith.subf %14, %17 : vector<8x8xf32>
    %19 = math.exp %18 : vector<8x8xf32>
    %cst_8 = arith.constant dense<0.000000e+00> : vector<8xf32>
    %20 = vector.multi_reduction <add>, %19, %cst_8 [1] : vector<8x8xf32> to vector<8xf32>
    %21 = vector.shape_cast %20 : vector<8xf32> to vector<8x1xf32>
    %22 = tpu.reciprocal %21 {approx = true} : vector<8x1xf32> -> vector<8x1xf32>
    %23 = vector.broadcast %22 : vector<8x1xf32> to vector<8x8xf32>
    %24 = arith.mulf %19, %23 : vector<8x8xf32>
    %cst_9 = arith.constant dense<0.000000e+00> : vector<8x32xf32>
    %25 = tpu.matmul %24, %9, %cst_9 {dimension_numbers = #tpu.dot_dimension_numbers<[1], [0], [0], [1], [0, 0, 1, 1], [], []>} : vector<8x8xf32>, vector<8x32xf32>, vector<8x32xf32> -> vector<8x32xf32>
    %c0_10 = arith.constant 0 : index
    %c0_11 = arith.constant 0 : index
    %c0_12 = arith.constant 0 : index
    %26 = vector.load %arg6[%c0_10, %c0_11, %c0_12] : memref<1x8x32xf32, #tpu.memory_space<vmem>>, vector<1x8x32xf32>
    %27 = vector.shape_cast %26 : vector<1x8x32xf32> to vector<8x32xf32>
    %28 = vector.shape_cast %25 : vector<8x32xf32> to vector<1x8x32xf32>
    tpu.vector_store %arg6[%c0_10, %c0_11, %c0_12], %28 {strides = array<i32>} : memref<1x8x32xf32, #tpu.memory_space<vmem>>, vector<1x8x32xf32>,
    return
  }
  func.func @transform_0(%arg0: i32, %arg1: i32) -> (i32, i32, i32) {
    %c0_i32 = arith.constant 0 : i32
    %c0_i32_0 = arith.constant 0 : i32
    %c0_i32_1 = arith.constant 0 : i32
    return %arg0, %c0_i32, %c0_i32_0 : i32, i32, i32
  }
  func.func @transform_1(%arg0: i32, %arg1: i32) -> (i32, i32, i32) {
    %c0_i32 = arith.constant 0 : i32
    %c0_i32_0 = arith.constant 0 : i32
    %c0_i32_1 = arith.constant 0 : i32
    return %arg0, %c0_i32, %c0_i32_0 : i32, i32, i32
  }
  func.func @transform_2(%arg0: i32, %arg1: i32) -> (i32, i32) {
    %c0_i32 = arith.constant 0 : i32
    %c0_i32_0 = arith.constant 0 : i32
    %c0_i32_1 = arith.constant 0 : i32
    return %c0_i32, %c0_i32_0 : i32, i32
  }
  func.func @transform_3(%arg0: i32, %arg1: i32) -> (i32, i32) {
    %c0_i32 = arith.constant 0 : i32
    %c0_i32_0 = arith.constant 0 : i32
    %c0_i32_1 = arith.constant 0 : i32
    return %c0_i32, %c0_i32_0 : i32, i32
  }
  func.func @transform_4(%arg0: i32, %arg1: i32) -> (i32, i32, i32) {
    %c0_i32 = arith.constant 0 : i32
    %c0_i32_0 = arith.constant 0 : i32
    return %arg0, %arg1, %c0_i32 : i32, i32, i32
  }
}

module attributes {stable_mosaic.version = 11 : i64} {
  func.func @_splinter_attn_kernel(%arg0: i32, %arg1: i32, %arg2: memref<1x8x32xf32, #tpu.memory_space<vmem>>, %arg3: memref<1x1x8xf32, #tpu.memory_space<vmem>>, %arg4: memref<32x96xf32, #tpu.memory_space<vmem>>, %arg5: memref<1x96xf32, #tpu.memory_space<vmem>>, %arg6: memref<1x8x32xf32, #tpu.memory_space<vmem>>, %arg7: memref<8x96xf32, #tpu.memory_space<vmem>>) attributes {dimension_semantics = [#tpu.dimension_semantics<parallel>, #tpu.dimension_semantics<arbitrary>], iteration_bounds = array<i64: 2, 1>, scalar_prefetch = 0 : i64, scratch_operands = 1 : i64, tpu.core_type = #tpu.core_type<tc>, window_params = [{transform_indices = @transform_0, window_bounds = array<i64: 1, 8, 32>}, {transform_indices = @transform_1, window_bounds = array<i64: 1, 1, 8>}, {pipeline_mode = #tpu.pipeline_mode<synchronous>, transform_indices = @transform_2, window_bounds = array<i64: 32, 96>}, {pipeline_mode = #tpu.pipeline_mode<synchronous>, transform_indices = @transform_3, window_bounds = array<i64: 1, 96>}, {transform_indices = @transform_4, window_bounds = array<i64: 1, 8, 32>}]} {
    %c0_i32 = arith.constant 0 : i32
    %0 = arith.cmpi eq, %arg1, %c0_i32 : i32
    %1 = arith.extui %0 : i1 to i32
    %c0_i32_0 = arith.constant 0 : i32
    %2 = arith.cmpi ne, %1, %c0_i32_0 : i32
    scf.if %2 {
      %c0_13 = arith.constant 0 : index
      %c0_14 = arith.constant 0 : index
      %c0_15 = arith.constant 0 : index
      %29 = vector.load %arg2[%c0_13, %c0_14, %c0_15] : memref<1x8x32xf32, #tpu.memory_space<vmem>>, vector<1x8x32xf32>
      %30 = vector.shape_cast %29 : vector<1x8x32xf32> to vector<8x32xf32>
      %c0_16 = arith.constant 0 : index
      %c0_17 = arith.constant 0 : index
      %31 = vector.load %arg4[%c0_16, %c0_17] : memref<32x96xf32, #tpu.memory_space<vmem>>, vector<32x96xf32>
      %cst_18 = arith.constant dense<0.000000e+00> : vector<8x96xf32>
      %32 = tpu.matmul %30, %31, %cst_18 {dimension_numbers = #tpu.dot_dimension_numbers<[1], [0], [0], [1], [0, 0, 1, 1], [], []>} : vector<8x32xf32>, vector<32x96xf32>, vector<8x96xf32> -> vector<8x96xf32>
      %c0_19 = arith.constant 0 : index
      %c0_20 = arith.constant 0 : index
      %33 = vector.load %arg5[%c0_19, %c0_20] : memref<1x96xf32, #tpu.memory_space<vmem>>, vector<1x96xf32>
      %34 = vector.broadcast %33 : vector<1x96xf32> to vector<8x96xf32>
      %35 = arith.addf %32, %34 : vector<8x96xf32>
      %c0_21 = arith.constant 0 : index
      %c0_22 = arith.constant 0 : index
      %36 = vector.load %arg7[%c0_21, %c0_22] : memref<8x96xf32, #tpu.memory_space<vmem>>, vector<8x96xf32>
      tpu.vector_store %arg7[%c0_21, %c0_22], %35 {strides = array<i32>} : memref<8x96xf32, #tpu.memory_space<vmem>>, vector<8x96xf32>,
    } else {
    }
    %c8_i32 = arith.constant 8 : i32
    %3 = arith.muli %arg1, %c8_i32 : i32
    %c0_i32_1 = arith.constant 0 : i32
    %4 = arith.addi %3, %c0_i32_1 : i32
    %5 = tpu.assume_multiple %4, 8 : i32
    %6 = arith.index_cast %5 : i32 to index
    %c0 = arith.constant 0 : index
    %7 = vector.load %arg7[%6, %c0] : memref<8x96xf32, #tpu.memory_space<vmem>>, vector<8x32xf32>
    %c0_2 = arith.constant 0 : index
    %c32 = arith.constant 32 : index
    %8 = vector.load %arg7[%c0_2, %c32] : memref<8x96xf32, #tpu.memory_space<vmem>>, vector<8x32xf32>
    %c0_3 = arith.constant 0 : index
    %c64 = arith.constant 64 : index
    %9 = vector.load %arg7[%c0_3, %c64] : memref<8x96xf32, #tpu.memory_space<vmem>>, vector<8x32xf32>
    %cst = arith.constant dense<0.000000e+00> : vector<8x8xf32>
    %10 = tpu.matmul %7, %8, %cst {dimension_numbers = #tpu.dot_dimension_numbers<[1], [1], [0], [0], [0, 0, 1, 0], [], []>} : vector<8x32xf32>, vector<8x32xf32>, vector<8x8xf32> -> vector<8x8xf32>
    %c0_4 = arith.constant 0 : index
    %c0_5 = arith.constant 0 : index
    %c0_6 = arith.constant 0 : index
    %11 = vector.load %arg3[%c0_4, %c0_5, %c0_6] : memref<1x1x8xf32, #tpu.memory_space<vmem>>, vector<1x1x8xf32>
    %12 = vector.shape_cast %11 : vector<1x1x8xf32> to vector<1x8xf32>
    %13 = vector.broadcast %12 : vector<1x8xf32> to vector<8x8xf32>
    %14 = arith.addf %10, %13 : vector<8x8xf32>
    %cst_7 = arith.constant dense<0xFF800000> : vector<8xf32>
    %15 = vector.multi_reduction <maximumf>, %14, %cst_7 [1] : vector<8x8xf32> to vector<8xf32>
    %16 = vector.shape_cast %15 : vector<8xf32> to vector<8x1xf32>
    %17 = vector.broadcast %16 : vector<8x1xf32> to vector<8x8xf32>
    %18 = arith.subf %14, %17 : vector<8x8xf32>
    %19 = math.exp %18 : vector<8x8xf32>
    %cst_8 = arith.constant dense<0.000000e+00> : vector<8xf32>
    %20 = vector.multi_reduction <add>, %19, %cst_8 [1] : vector<8x8xf32> to vector<8xf32>
    %21 = vector.shape_cast %20 : vector<8xf32> to vector<8x1xf32>
    %22 = tpu.reciprocal %21 {approx = true} : vector<8x1xf32> -> vector<8x1xf32>
    %23 = vector.broadcast %22 : vector<8x1xf32> to vector<8x8xf32>
    %24 = arith.mulf %19, %23 : vector<8x8xf32>
    %cst_9 = arith.constant dense<0.000000e+00> : vector<8x32xf32>
    %25 = tpu.matmul %24, %9, %cst_9 {dimension_numbers = #tpu.dot_dimension_numbers<[1], [0], [0], [1], [0, 0, 1, 1], [], []>} : vector<8x8xf32>, vector<8x32xf32>, vector<8x32xf32> -> vector<8x32xf32>
    %c0_10 = arith.constant 0 : index
    %c0_11 = arith.constant 0 : index
    %c0_12 = arith.constant 0 : index
    %26 = vector.load %arg6[%c0_10, %c0_11, %c0_12] : memref<1x8x32xf32, #tpu.memory_space<vmem>>, vector<1x8x32xf32>
    %27 = vector.shape_cast %26 : vector<1x8x32xf32> to vector<8x32xf32>
    %28 = vector.shape_cast %25 : vector<8x32xf32> to vector<1x8x32xf32>
    tpu.vector_store %arg6[%c0_10, %c0_11, %c0_12], %28 {strides = array<i32>} : memref<1x8x32xf32, #tpu.memory_space<vmem>>, vector<1x8x32xf32>,
    return
  }
  func.func @transform_0(%arg0: i32, %arg1: i32) -> (i32, i32, i32) {
    %c0_i32 = arith.constant 0 : i32
    %c0_i32_0 = arith.constant 0 : i32
    %c0_i32_1 = arith.constant 0 : i32
    return %arg0, %c0_i32, %c0_i32_0 : i32, i32, i32
  }
  func.func @transform_1(%arg0: i32, %arg1: i32) -> (i32, i32, i32) {
    %c0_i32 = arith.constant 0 : i32
    %c0_i32_0 = arith.constant 0 : i32
    %c0_i32_1 = arith.constant 0 : i32
    return %arg0, %c0_i32, %c0_i32_0 : i32, i32, i32
  }
  func.func @transform_2(%arg0: i32, %arg1: i32) -> (i32, i32) {
    %c0_i32 = arith.constant 0 : i32
    %c0_i32_0 = arith.constant 0 : i32
    %c0_i32_1 = arith.constant 0 : i32
    return %c0_i32, %c0_i32_0 : i32, i32
  }
  func.func @transform_3(%arg0: i32, %arg1: i32) -> (i32, i32) {
    %c0_i32 = arith.constant 0 : i32
    %c0_i32_0 = arith.constant 0 : i32
    %c0_i32_1 = arith.constant 0 : i32
    return %c0_i32, %c0_i32_0 : i32, i32
  }
  func.func @transform_4(%arg0: i32, %arg1: i32) -> (i32, i32, i32) {
    %c0_i32 = arith.constant 0 : i32
    %c0_i32_0 = arith.constant 0 : i32
    return %arg0, %arg1, %c0_i32 : i32, i32, i32
  }
}

</mosaic_0001>

<bundles_post_ra>
// kernel: tpu_custom_call.1
= control target key start
LH: loop header
LB: loop body
LE: loop exit
PB: predicated region body
PF: predicated region fallthrough
CT: control target
= control target key end

     0   :  { %s1008_s0 = inlined_call_operand.hbm [shape: f32[2,8,32], index: 0, kind: input, shape index: {}]   ;;  %s1009_s1 = inlined_call_operand.hbm [shape: f32[2,1,8], index: 1, kind: input, shape index: {}]   ;;  %s1010_s2 = inlined_call_operand.hbm [shape: f32[32,96], index: 2, kind: input, shape index: {}]   ;;  %s1011_s3 = inlined_call_operand.vmem [shape: f32[1,96], index: 3, kind: input, shape index: {}]   ;;  %s1012_s4 = inlined_call_operand.hbm [shape: f32[2,8,32], index: 4, kind: output, shape index: {}]  }
   0x1   :  { %1016 = sst [smem:[#allocation18_spill]] %s1010_s2 }
   0x2   :  { %9 = vsyncpa [#allocation4], 0 }
   0x3   :  { %11 = vsyncpa [#allocation4 + $0x1], 0 }
   0x4   :  { %12 = vsyncpa [#allocation7], 0 }
   0x5   :  { %14 = vsyncpa [#allocation7 + $0x1], 0 }
   0x6   :  { %15 = vsyncpa [#allocation5], 0 }
   0x7   :  { %17 = vsyncpa [#allocation5 + $0x1], 0  ;;  %s840_s15 = smov 0   ;;  %s842_s16 = smov 0  }
   0x8   :  { %s844_s17 = smov 0   ;;  %s846_s18 = smov 0  }
   0x9   :  { %s848_s19 = smov 0   ;;  %s850_s20 = smov 0  }
   0xa LB: > { %1017 = sst [smem:[#allocation14_spill]] %s796_s17  ;;  %s871_s21 = sadd.s32 4294967295, %s808_s20   ;;  %s808_s20 = sphi %s850_s20, %s23_s20   ;;  %s804_s19 = sphi %s848_s19, %s1034_s19   ;;  %s800_s18 = sphi %s846_s18, %s1033_s18   ;;  %s796_s17 = sphi %s844_s17, %s1029_s17   ;;  %s792_s16 = sphi %s842_s16, %s1032_s16   ;;  %s788_s15 = sphi %s840_s15, %s1031_s15  }
   0xb   : > { %p523_p0 = scmp.ge.s32.totalorder %s808_s20, 1  ;;  %p56_p1 = scmp.eq.s32.totalorder %s871_s21, 0 }
   0xc   : > { %p162_p2 = scmp.lt.s32.totalorder %s808_s20, 3  ;;  %s1018_s2 = sld [smem:[#allocation18_spill]] }
   0xd   : > { %s810_s26 = smov [#allocation8]   ;;  %p525_p6 = scmp.ge.s32.totalorder %s808_s20, 2 }
   0xe   : > { %p879_p3 = pnand %p523_p0, %p162_p2  ;;  %s175_s27 = sshll.u32 %s810_s26, 4  ;;  %s176_s27 = int_to_ptr.vmem [resolvable:$true] %s175_s27 }
   0xf   : > { %s811_s28 = smov 128   ;;  %s812_s29 = smov 8  }
  0x10   : > { %p550_p4 = pneg %p879_p3  ;;  %s522_s30 = sadd.s32 4294967294, %s808_s20  }
  0x11   : > { %s35_s5 = sadd.s32 1, %s804_s19  ;;  %s42_s6 = sadd.s32 1, %s796_s17 }
  0x12   : > { %s173_s24 = sshll.u32 %s1018_s2, 4  ;;  %p551_p5 = pnand %p550_p4, %p56_p1  ;;  %s174_s24 = int_to_ptr.hbm [resolvable:$true] %s173_s24 }
  0x13   : > { %p37_p7 = scmp.ge.s32.totalorder %s35_s5, 2  ;;  %p49_p8 = scmp.ne.s32.totalorder %s796_s17, %s792_s16 }
  0x14   : > { %553 = dma.hbm_to_vmem [thread:$0]  (!%p551_p5), %s174_s24, 512, %s176_s27, [#allocation7], %s811_s28, %s811_s28, %s812_s29  }
  0x15   : > { %p50_p9 = scmp.eq.s32.totalorder %s808_s20, 0  ;;  %p55_p10 = scmp.ne.s32.totalorder %s792_s16, %s788_s15 }
  0x16   : > { %s1036_s5 = smov (%p37_p7, %s35_s5), 0  ;;  %p149_p13 = scmp.eq.s32.totalorder %s871_s21, 1 }
  0x17   : > { %1020 = sst [smem:[#allocation15_spill]] %s1036_s5  ;;  %p898_p11 = por %p50_p9, %p49_p8 }
  0x18   : > { %p904_p12 = por %p56_p1, %p55_p10  ;;  %s39_s9 = ssub.s32 %s804_s19, %s1036_s5 }
  0x19   : > { %p40_p0 = scmp.eq.s32.totalorder %s39_s9, 0  ;;  %p155_p2 = scmp.eq.s32.totalorder %s522_s30, 1 }
  0x1a   : > { %p911_p4 = por %p149_p13, %p49_p8  ;;  %p566_p5 = scmp.lt.s32.totalorder %s808_s20, 2 }
  0x1b   : > { %s917_s11 = scalar_select %p40_p0, %s796_s17, %s42_s6  }
  0x1c   : > { %p919_p7 = por %p155_p2, %p55_p10  ;;  %s192_s13 = sand.u32 1, %s796_s17  }
  0x1d   : > { %1024 = sst [smem:[#allocation16_spill]] %s917_s11  ;;  %s526_s14 = sshll.u32 %s192_s13, 3 }
  0x1e   : > { %s1025_s12 = scalar_select %p919_p7, 1, 0 }
  0x1f   : > { %s527_s22 = sshll.u32 %s804_s19, 3  ;;  %s196_s27 = scalar_lea.vmem [#allocation3], %s526_s14 }
  0x20   : > { %1026 = sst [smem:[#allocation17_spill]] %s1025_s12  ;;  %s200_s26 = scalar_lea.hbm %s1008_s0, %s527_s22 }
  0x21   : > { %s204_s28 = sshll.u32 %s196_s27, 4  ;;  %s202_s29 = sshll.u32 %s200_s26, 4  ;;  %s205_s28 = int_to_ptr.vmem [resolvable:$true] %s204_s28  ;;  %s203_s29 = int_to_ptr.hbm [resolvable:$true] %s202_s29 }
  0x22   : > { %p555_p8 = pnand %p566_p5, %p898_p11  ;;  %s211_s30 = sand.u32 1, %s808_s20  }
  0x23   : > { %s193_s6 = scalar_lea.sflag [#allocation4], %s192_s13  ;;  %s217_s5 = scalar_lea.hbm %s1009_s1, %s804_s19 }
  0x24   : > { %557 = dma.hbm_to_vmem [thread:$0]  (!%p555_p8), %s203_s29, 128, %s205_s28, %s193_s6  }
  0x25   : > { %s214_s11 = scalar_lea.vmem [#allocation6], %s192_s13  ;;  %s219_s12 = sshll.u32 %s217_s5, 4  ;;  %s220_s12 = int_to_ptr.hbm [resolvable:$true] %s219_s12 }
  0x26   : > { %s221_s17 = sshll.u32 %s214_s11, 4  ;;  %s212_s22 = scalar_lea.sflag [#allocation7], %s211_s30  ;;  %s222_s17 = int_to_ptr.vmem [resolvable:$true] %s221_s17 }
  0x27   : > { %560 = dma.hbm_to_vmem [thread:$0]  (!%p555_p8), %s220_s12, 16, %s222_s17, %s212_s22  }
  0x28   : > { %230 = sbr.rel (%p879_p3) target bundleno = 846 (0x34e), region = 36  ;;  %s938_s7 = sand.u32 (!%p879_p3), 1, %s792_s16  }
  0x29   : > { %s529_s14 = sshll.u32 (!%p879_p3), %s938_s7, 3  ;;  %s233_s2 = scalar_lea.sflag (!%p879_p3), [#allocation4], %s938_s7 }
  0x2a   : > { %s236_s13 = scalar_lea.vmem (!%p879_p3), [#allocation3], %s529_s14 }
  0x2d   : > { %771 = dma.done.wait (%p904_p12), %s233_s2, 128  }
  0x2e   : > { %773 = vsyncadd (%p904_p12), %s233_s2, 4294967168  ;;  %s242_s17 = sand.u32 1, %s871_s21   ;;  %s245_s5 = scalar_lea.vmem [#allocation6], %s938_s7 }
  0x2f   : > { %s243_s25 = scalar_lea.sflag [#allocation7], %s242_s17 }
  0x30   : > { %775 = dma.done.wait (%p904_p12), %s243_s25, 16  }
  0x31   : > { %777 = vsyncadd (%p904_p12), %s243_s25, 4294967280 }
  0x32   : > { %779 = dma.done.wait (%p56_p1), [#allocation7], 512  }
  0x33   : > { %781 = vsyncadd (%p56_p1), [#allocation7], 4294966784  ;;  %v288_v0 = vld [vmem:[#allocation8 + $0x18] sm:$0xff]  ;;  %v287_v1 = vld [vmem:[#allocation8 + $0x10] sm:$0xff]  ;;  %vm293_vm0 = vcmask 261120   ;;  %vm317_vm1 = vcmask 785408  }
  0x34   : > { %309 = vmatpush.msra.mxu0 %v288_v0  ;;  %v286_v2 = vld [vmem:[#allocation8 + $0x8] sm:$0xff]  ;;  %v285_v3 = vld [vmem:[#allocation8] sm:$0xff]  ;;  %s813_s21 = smov 96   ;;  %vm356_vm2 = vcmask 64512   ;;  %s814_s12 = smov 64  }
  0x35   : > { %v284_v4 = vld [vmem:[%s236_s13] sm:$0xff]  ;;  %v622_v5 = vld [vmem:[%s1011_s3] ss:$0 sm:$0xff]  ;;  %s537_s23 = sshll.u32 %s800_s18, 3  ;;  %s279_s28 = scalar_lea.vmem [#allocation9], %s529_s14 }
  0x36   : > { %310 = vmatpush.msra.mxu0 %v287_v1  ;;  %v623_v10 = vld [vmem:[%s245_s5] ss:$0 sm:$0xff]  ;;  %s407_s27 = scalar_lea.hbm %s1012_s4, %s537_s23  ;;  %s409_s29 = sshll.u32 %s279_s28, 4  ;;  %s410_s29 = int_to_ptr.vmem [resolvable:$true] %s409_s29 }
  0x37   : > { %s411_s30 = sshll.u32 %s407_s27, 4  ;;  %s396_s6 = scalar_lea.sflag [#allocation5], %s938_s7  ;;  %s412_s30 = int_to_ptr.hbm [resolvable:$true] %s411_s30 }
  0x38   : > { %311 = vmatpush.msra.mxu0 %v286_v2  ;;  %s732_s9 = sshra.s32 %s412_s30, 4  ;;  %s738_s13 = scalar_lea.hbm %s1012_s4, 16  ;;  %s733_s9 = int_to_ptr.hbm [resolvable:$true] %s732_s9 }
  0x39   : > { %s734_s22 = scalar_lea.hbm %s733_s9, 8  ;;  %p739_p10 = scmp.lt.s32.totalorder %s733_s9, %s1012_s4 }
  0x3a   : > { %312 = vmatpush.msra.mxu0 %v285_v3  ;;  %p735_p1 = scmp.ne.s32.totalorder %s733_s9, %s734_s22  ;;  %p740_p11 = scmp.lt.s32.totalorder %s738_s13, %s734_s22 }
  0x3b   : > { %532 = vmatmul.msk.f32.vlgmr.msra.gmra.mxu0 %vm293_vm0, %v284_v4 }
  0x3c   : > { %p736_p3 = pnand %p735_p1, %p911_p4  ;;  %p741_p12 = por %p740_p11, %p739_p10 }
  0x3e   : > { %p737_p9 = pneg %p736_p3 }
  0x40   : > { %p742_p13 = pnand %p741_p12, %p737_p9 }
  0xb8   : > { %v314_v6 = vpop.f32.mrf.mxu0 }
  0xb9   : > { %v315_v7 = vadd.f32 %v622_v5, %v314_v6 }
  0xbb   : > { %318 = vst.msk [vmem:[#allocation2] sm:$0xff] %vm317_vm1, %v315_v7 }
  0xc2   : > { %v322_v8 = vld [vmem:[#allocation2] sm:$0xff] }
  0xc3   : > { %328 = vrot.lane.b32.xlu0 %v322_v8, %s813_s21 }
 0x135   : > { %v329_v9 = vpop.permute.xlu0 %328 }
 0x136   : > { %533 = vmatpush.xpose.msk.msra.mxu1 %vm293_vm0, %v329_v9 }
 0x139   : > { %534 = vmatmul.msk.f32.vlgmr.msra.gmra.mxu1 %vm293_vm0, %v322_v8 }
 0x1b6   : > { %v353_v11 = vpop.f32.mrf.mxu1 }
 0x1b7   : > { %v354_v12 = vadd.f32 %v623_v10, %v353_v11 }
 0x1b9   : > { %v357_v13 = vsel %vm356_vm2, %v354_v12, -inf }
 0x1ba   : > { %358 = vmax.xlane.f32.xlu0 %v357_v13 }
 0x22d   : > { %v359_v14 = vpop.xlane.xlu0 %358 }
 0x22e   : > { %v360_v15 = vsub.f32 %v354_v12, %v359_v14 }
 0x230   : > { %v361_v16 = vmul.f32 1.442695, %v360_v15 }
 0x232   : > { %624 = vpow2.f32 %v361_v16 }
 0x238   : > { %v625_v17 = vpop.eup %624 }
 0x239   : > { %v363_v18 = vsel %vm356_vm2, %v625_v17, 0.0 }
 0x23a   : > { %364 = vadd.xlane.f32.xlu1 %v363_v18 }
 0x253   : > { %368 = vrot.lane.b32.xlu1 %v322_v8, %s814_s12 }
 0x2ad   : > { %v365_v19 = vpop.xlane.xlu1 %364 }
 0x2ae   : > { %626 = vrcp.f32 %v365_v19 }
 0x2b4   : > { %v627_v20 = vpop.eup %626 }
 0x2b5   : > { %v367_v22 = vmul.f32 %v627_v20, %v625_v17 }
 0x2c5   : > { %v369_v21 = vpop.permute.xlu1 %368 }
 0x2c6   : > { %389 = vmatpush.msra.mxu2 %v369_v21 }
 0x2c7   : > { %535 = vmatmul.msk.f32.vlgmr.msra.gmra.mxu2 %vm356_vm2, %v367_v22 }
 0x34a   : > { %v391_v23 = vpop.f32.mrf.mxu2 }
 0x34b   : > { %394 = vst.msk [vmem:[%s279_s28] sm:$0xff] %vm293_vm0, %v391_v23 }
 0x34c   : > { %745 = shalt.err (!%p742_p13)
}
 0x34d   : > { %548 = dma.vmem_to_hbm [thread:$0]  (%p911_p4), %s410_s29, 128, %s412_s30, %s396_s6  }
 0x34e PF: > { %s423_s25 = sand.u32 1, %s788_s15   ;;  %p562_p0 = pnand %p525_p6, %p919_p7 }
 0x34f   : > { %s424_s5 = scalar_lea.sflag [#allocation5], %s423_s25 }
 0x350   : > { %p563_p2 = pneg %p562_p0 }
 0x352   : > { %783 = dma.done.wait (%p563_p2), %s424_s5, 128  }
 0x353   : > { %785 = vsyncadd (%p563_p2), %s424_s5, 4294967168  ;;  %s23_s20 = sadd.s32 1, %s808_s20   ;;  %s1028_s8 = sld [smem:[#allocation14_spill]] }
 0x354   : > { %p20_p5 = scmp.ge.s32.totalorder %s23_s20, 4   ;;  %s1029_s17 = sld [smem:[#allocation16_spill]] }
 0x355   : > { %s1030_s10 = sld [smem:[#allocation15_spill]]  ;;  %s1031_s15 = smov %s792_s16 }
 0x356   : > { %s1033_s18 = smov %s804_s19 }
 0x357   :  { %22 = sbr.rel (!%p20_p5) target bundleno = 10 (0xa), region = 103 }
 0x359   : > { %s1032_s16 = smov %s1028_s8 }
 0x35b   : > { %s1034_s19 = smov %s1030_s10 }
 0x35c   :  { %430 = vsyncpa [#allocation4], 1 }
 0x35d   :  { %432 = vsyncpa [#allocation4 + $0x1], 1 }
 0x35e   :  { %433 = vsyncpa [#allocation7], 1 }
 0x35f   :  { %435 = vsyncpa [#allocation7 + $0x1], 1 }
 0x360   :  { %436 = vsyncpa [#allocation5], 1 }
 0x361   :  { %438 = vsyncpa [#allocation5 + $0x1], 1 }

// kernel: tpu_custom_call.1
= control target key start
LH: loop header
LB: loop body
LE: loop exit
PB: predicated region body
PF: predicated region fallthrough
CT: control target
= control target key end

     0   :  { %s1008_s0 = inlined_call_operand.hbm [shape: f32[2,8,32], index: 0, kind: input, shape index: {}]   ;;  %s1009_s1 = inlined_call_operand.hbm [shape: f32[2,1,8], index: 1, kind: input, shape index: {}]   ;;  %s1010_s2 = inlined_call_operand.hbm [shape: f32[32,96], index: 2, kind: input, shape index: {}]   ;;  %s1011_s3 = inlined_call_operand.vmem [shape: f32[1,96], index: 3, kind: input, shape index: {}]   ;;  %s1012_s4 = inlined_call_operand.hbm [shape: f32[2,8,32], index: 4, kind: output, shape index: {}]  }
   0x1   :  { %1016 = sst [smem:[#allocation18_spill]] %s1010_s2 }
   0x2   :  { %9 = vsyncpa [#allocation4], 0 }
   0x3   :  { %11 = vsyncpa [#allocation4 + $0x1], 0 }
   0x4   :  { %12 = vsyncpa [#allocation7], 0 }
   0x5   :  { %14 = vsyncpa [#allocation7 + $0x1], 0 }
   0x6   :  { %15 = vsyncpa [#allocation5], 0 }
   0x7   :  { %17 = vsyncpa [#allocation5 + $0x1], 0  ;;  %s840_s15 = smov 0   ;;  %s842_s16 = smov 0  }
   0x8   :  { %s844_s17 = smov 0   ;;  %s846_s18 = smov 0  }
   0x9   :  { %s848_s19 = smov 0   ;;  %s850_s20 = smov 0  }
   0xa LB: > { %1017 = sst [smem:[#allocation14_spill]] %s796_s17  ;;  %s871_s21 = sadd.s32 4294967295, %s808_s20   ;;  %s808_s20 = sphi %s850_s20, %s23_s20   ;;  %s804_s19 = sphi %s848_s19, %s1034_s19   ;;  %s800_s18 = sphi %s846_s18, %s1033_s18   ;;  %s796_s17 = sphi %s844_s17, %s1029_s17   ;;  %s792_s16 = sphi %s842_s16, %s1032_s16   ;;  %s788_s15 = sphi %s840_s15, %s1031_s15  }
   0xb   : > { %p523_p0 = scmp.ge.s32.totalorder %s808_s20, 1  ;;  %p56_p1 = scmp.eq.s32.totalorder %s871_s21, 0 }
   0xc   : > { %p162_p2 = scmp.lt.s32.totalorder %s808_s20, 3  ;;  %s1018_s2 = sld [smem:[#allocation18_spill]] }
   0xd   : > { %s810_s26 = smov [#allocation8]   ;;  %p525_p6 = scmp.ge.s32.totalorder %s808_s20, 2 }
   0xe   : > { %p879_p3 = pnand %p523_p0, %p162_p2  ;;  %s175_s27 = sshll.u32 %s810_s26, 4  ;;  %s176_s27 = int_to_ptr.vmem [resolvable:$true] %s175_s27 }
   0xf   : > { %s811_s28 = smov 128   ;;  %s812_s29 = smov 8  }
  0x10   : > { %p550_p4 = pneg %p879_p3  ;;  %s522_s30 = sadd.s32 4294967294, %s808_s20  }
  0x11   : > { %s35_s5 = sadd.s32 1, %s804_s19  ;;  %s42_s6 = sadd.s32 1, %s796_s17 }
  0x12   : > { %s173_s24 = sshll.u32 %s1018_s2, 4  ;;  %p551_p5 = pnand %p550_p4, %p56_p1  ;;  %s174_s24 = int_to_ptr.hbm [resolvable:$true] %s173_s24 }
  0x13   : > { %p37_p7 = scmp.ge.s32.totalorder %s35_s5, 2  ;;  %p49_p8 = scmp.ne.s32.totalorder %s796_s17, %s792_s16 }
  0x14   : > { %553 = dma.hbm_to_vmem [thread:$0]  (!%p551_p5), %s174_s24, 512, %s176_s27, [#allocation7], %s811_s28, %s811_s28, %s812_s29  }
  0x15   : > { %p50_p9 = scmp.eq.s32.totalorder %s808_s20, 0  ;;  %p55_p10 = scmp.ne.s32.totalorder %s792_s16, %s788_s15 }
  0x16   : > { %s1036_s5 = smov (%p37_p7, %s35_s5), 0  ;;  %p149_p13 = scmp.eq.s32.totalorder %s871_s21, 1 }
  0x17   : > { %1020 = sst [smem:[#allocation15_spill]] %s1036_s5  ;;  %p898_p11 = por %p50_p9, %p49_p8 }
  0x18   : > { %p904_p12 = por %p56_p1, %p55_p10  ;;  %s39_s9 = ssub.s32 %s804_s19, %s1036_s5 }
  0x19   : > { %p40_p0 = scmp.eq.s32.totalorder %s39_s9, 0  ;;  %p155_p2 = scmp.eq.s32.totalorder %s522_s30, 1 }
  0x1a   : > { %p911_p4 = por %p149_p13, %p49_p8  ;;  %p566_p5 = scmp.lt.s32.totalorder %s808_s20, 2 }
  0x1b   : > { %s917_s11 = scalar_select %p40_p0, %s796_s17, %s42_s6  }
  0x1c   : > { %p919_p7 = por %p155_p2, %p55_p10  ;;  %s192_s13 = sand.u32 1, %s796_s17  }
  0x1d   : > { %1024 = sst [smem:[#allocation16_spill]] %s917_s11  ;;  %s526_s14 = sshll.u32 %s192_s13, 3 }
  0x1e   : > { %s1025_s12 = scalar_select %p919_p7, 1, 0 }
  0x1f   : > { %s527_s22 = sshll.u32 %s804_s19, 3  ;;  %s196_s27 = scalar_lea.vmem [#allocation3], %s526_s14 }
  0x20   : > { %1026 = sst [smem:[#allocation17_spill]] %s1025_s12  ;;  %s200_s26 = scalar_lea.hbm %s1008_s0, %s527_s22 }
  0x21   : > { %s204_s28 = sshll.u32 %s196_s27, 4  ;;  %s202_s29 = sshll.u32 %s200_s26, 4  ;;  %s205_s28 = int_to_ptr.vmem [resolvable:$true] %s204_s28  ;;  %s203_s29 = int_to_ptr.hbm [resolvable:$true] %s202_s29 }
  0x22   : > { %p555_p8 = pnand %p566_p5, %p898_p11  ;;  %s211_s30 = sand.u32 1, %s808_s20  }
  0x23   : > { %s193_s6 = scalar_lea.sflag [#allocation4], %s192_s13  ;;  %s217_s5 = scalar_lea.hbm %s1009_s1, %s804_s19 }
  0x24   : > { %557 = dma.hbm_to_vmem [thread:$0]  (!%p555_p8), %s203_s29, 128, %s205_s28, %s193_s6  }
  0x25   : > { %s214_s11 = scalar_lea.vmem [#allocation6], %s192_s13  ;;  %s219_s12 = sshll.u32 %s217_s5, 4  ;;  %s220_s12 = int_to_ptr.hbm [resolvable:$true] %s219_s12 }
  0x26   : > { %s221_s17 = sshll.u32 %s214_s11, 4  ;;  %s212_s22 = scalar_lea.sflag [#allocation7], %s211_s30  ;;  %s222_s17 = int_to_ptr.vmem [resolvable:$true] %s221_s17 }
  0x27   : > { %560 = dma.hbm_to_vmem [thread:$0]  (!%p555_p8), %s220_s12, 16, %s222_s17, %s212_s22  }
  0x28   : > { %230 = sbr.rel (%p879_p3) target bundleno = 846 (0x34e), region = 36  ;;  %s938_s7 = sand.u32 (!%p879_p3), 1, %s792_s16  }
  0x29   : > { %s529_s14 = sshll.u32 (!%p879_p3), %s938_s7, 3  ;;  %s233_s2 = scalar_lea.sflag (!%p879_p3), [#allocation4], %s938_s7 }
  0x2a   : > { %s236_s13 = scalar_lea.vmem (!%p879_p3), [#allocation3], %s529_s14 }
  0x2d   : > { %771 = dma.done.wait (%p904_p12), %s233_s2, 128  }
  0x2e   : > { %773 = vsyncadd (%p904_p12), %s233_s2, 4294967168  ;;  %s242_s17 = sand.u32 1, %s871_s21   ;;  %s245_s5 = scalar_lea.vmem [#allocation6], %s938_s7 }
  0x2f   : > { %s243_s25 = scalar_lea.sflag [#allocation7], %s242_s17 }
  0x30   : > { %775 = dma.done.wait (%p904_p12), %s243_s25, 16  }
  0x31   : > { %777 = vsyncadd (%p904_p12), %s243_s25, 4294967280 }
  0x32   : > { %779 = dma.done.wait (%p56_p1), [#allocation7], 512  }
  0x33   : > { %781 = vsyncadd (%p56_p1), [#allocation7], 4294966784  ;;  %v288_v0 = vld [vmem:[#allocation8 + $0x18] sm:$0xff]  ;;  %v287_v1 = vld [vmem:[#allocation8 + $0x10] sm:$0xff]  ;;  %vm293_vm0 = vcmask 261120   ;;  %vm317_vm1 = vcmask 785408  }
  0x34   : > { %309 = vmatpush.msra.mxu0 %v288_v0  ;;  %v286_v2 = vld [vmem:[#allocation8 + $0x8] sm:$0xff]  ;;  %v285_v3 = vld [vmem:[#allocation8] sm:$0xff]  ;;  %s813_s21 = smov 96   ;;  %vm356_vm2 = vcmask 64512   ;;  %s814_s12 = smov 64  }
  0x35   : > { %v284_v4 = vld [vmem:[%s236_s13] sm:$0xff]  ;;  %v622_v5 = vld [vmem:[%s1011_s3] ss:$0 sm:$0xff]  ;;  %s537_s23 = sshll.u32 %s800_s18, 3  ;;  %s279_s28 = scalar_lea.vmem [#allocation9], %s529_s14 }
  0x36   : > { %310 = vmatpush.msra.mxu0 %v287_v1  ;;  %v623_v10 = vld [vmem:[%s245_s5] ss:$0 sm:$0xff]  ;;  %s407_s27 = scalar_lea.hbm %s1012_s4, %s537_s23  ;;  %s409_s29 = sshll.u32 %s279_s28, 4  ;;  %s410_s29 = int_to_ptr.vmem [resolvable:$true] %s409_s29 }
  0x37   : > { %s411_s30 = sshll.u32 %s407_s27, 4  ;;  %s396_s6 = scalar_lea.sflag [#allocation5], %s938_s7  ;;  %s412_s30 = int_to_ptr.hbm [resolvable:$true] %s411_s30 }
  0x38   : > { %311 = vmatpush.msra.mxu0 %v286_v2  ;;  %s732_s9 = sshra.s32 %s412_s30, 4  ;;  %s738_s13 = scalar_lea.hbm %s1012_s4, 16  ;;  %s733_s9 = int_to_ptr.hbm [resolvable:$true] %s732_s9 }
  0x39   : > { %s734_s22 = scalar_lea.hbm %s733_s9, 8  ;;  %p739_p10 = scmp.lt.s32.totalorder %s733_s9, %s1012_s4 }
  0x3a   : > { %312 = vmatpush.msra.mxu0 %v285_v3  ;;  %p735_p1 = scmp.ne.s32.totalorder %s733_s9, %s734_s22  ;;  %p740_p11 = scmp.lt.s32.totalorder %s738_s13, %s734_s22 }
  0x3b   : > { %532 = vmatmul.msk.f32.vlgmr.msra.gmra.mxu0 %vm293_vm0, %v284_v4 }
  0x3c   : > { %p736_p3 = pnand %p735_p1, %p911_p4  ;;  %p741_p12 = por %p740_p11, %p739_p10 }
  0x3e   : > { %p737_p9 = pneg %p736_p3 }
  0x40   : > { %p742_p13 = pnand %p741_p12, %p737_p9 }
  0xb8   : > { %v314_v6 = vpop.f32.mrf.mxu0 }
  0xb9   : > { %v315_v7 = vadd.f32 %v622_v5, %v314_v6 }
  0xbb   : > { %318 = vst.msk [vmem:[#allocation2] sm:$0xff] %vm317_vm1, %v315_v7 }
  0xc2   : > { %v322_v8 = vld [vmem:[#allocation2] sm:$0xff] }
  0xc3   : > { %328 = vrot.lane.b32.xlu0 %v322_v8, %s813_s21 }
 0x135   : > { %v329_v9 = vpop.permute.xlu0 %328 }
 0x136   : > { %533 = vmatpush.xpose.msk.msra.mxu1 %vm293_vm0, %v329_v9 }
 0x139   : > { %534 = vmatmul.msk.f32.vlgmr.msra.gmra.mxu1 %vm293_vm0, %v322_v8 }
 0x1b6   : > { %v353_v11 = vpop.f32.mrf.mxu1 }
 0x1b7   : > { %v354_v12 = vadd.f32 %v623_v10, %v353_v11 }
 0x1b9   : > { %v357_v13 = vsel %vm356_vm2, %v354_v12, -inf }
 0x1ba   : > { %358 = vmax.xlane.f32.xlu0 %v357_v13 }
 0x22d   : > { %v359_v14 = vpop.xlane.xlu0 %358 }
 0x22e   : > { %v360_v15 = vsub.f32 %v354_v12, %v359_v14 }
 0x230   : > { %v361_v16 = vmul.f32 1.442695, %v360_v15 }
 0x232   : > { %624 = vpow2.f32 %v361_v16 }
 0x238   : > { %v625_v17 = vpop.eup %624 }
 0x239   : > { %v363_v18 = vsel %vm356_vm2, %v625_v17, 0.0 }
 0x23a   : > { %364 = vadd.xlane.f32.xlu1 %v363_v18 }
 0x253   : > { %368 = vrot.lane.b32.xlu1 %v322_v8, %s814_s12 }
 0x2ad   : > { %v365_v19 = vpop.xlane.xlu1 %364 }
 0x2ae   : > { %626 = vrcp.f32 %v365_v19 }
 0x2b4   : > { %v627_v20 = vpop.eup %626 }
 0x2b5   : > { %v367_v22 = vmul.f32 %v627_v20, %v625_v17 }
 0x2c5   : > { %v369_v21 = vpop.permute.xlu1 %368 }
 0x2c6   : > { %389 = vmatpush.msra.mxu2 %v369_v21 }
 0x2c7   : > { %535 = vmatmul.msk.f32.vlgmr.msra.gmra.mxu2 %vm356_vm2, %v367_v22 }
 0x34a   : > { %v391_v23 = vpop.f32.mrf.mxu2 }
 0x34b   : > { %394 = vst.msk [vmem:[%s279_s28] sm:$0xff] %vm293_vm0, %v391_v23 }
 0x34c   : > { %745 = shalt.err (!%p742_p13)
}
 0x34d   : > { %548 = dma.vmem_to_hbm [thread:$0]  (%p911_p4), %s410_s29, 128, %s412_s30, %s396_s6  }
 0x34e PF: > { %s423_s25 = sand.u32 1, %s788_s15   ;;  %p562_p0 = pnand %p525_p6, %p919_p7 }
 0x34f   : > { %s424_s5 = scalar_lea.sflag [#allocation5], %s423_s25 }
 0x350   : > { %p563_p2 = pneg %p562_p0 }
 0x352   : > { %783 = dma.done.wait (%p563_p2), %s424_s5, 128  }
 0x353   : > { %785 = vsyncadd (%p563_p2), %s424_s5, 4294967168  ;;  %s23_s20 = sadd.s32 1, %s808_s20   ;;  %s1028_s8 = sld [smem:[#allocation14_spill]] }
 0x354   : > { %p20_p5 = scmp.ge.s32.totalorder %s23_s20, 4   ;;  %s1029_s17 = sld [smem:[#allocation16_spill]] }
 0x355   : > { %s1030_s10 = sld [smem:[#allocation15_spill]]  ;;  %s1031_s15 = smov %s792_s16 }
 0x356   : > { %s1033_s18 = smov %s804_s19 }
 0x357   :  { %22 = sbr.rel (!%p20_p5) target bundleno = 10 (0xa), region = 103 }
 0x359   : > { %s1032_s16 = smov %s1028_s8 }
 0x35b   : > { %s1034_s19 = smov %s1030_s10 }
 0x35c   :  { %430 = vsyncpa [#allocation4], 1 }
 0x35d   :  { %432 = vsyncpa [#allocation4 + $0x1], 1 }
 0x35e   :  { %433 = vsyncpa [#allocation7], 1 }
 0x35f   :  { %435 = vsyncpa [#allocation7 + $0x1], 1 }
 0x360   :  { %436 = vsyncpa [#allocation5], 1 }
 0x361   :  { %438 = vsyncpa [#allocation5 + $0x1], 1 }

</bundles_post_ra>
